<compile_context>
chip_gen: v5e
topology: v5e:2x2
jax: 0.10.0
libtpu: 0.0.40
codegen_flags: <defaults>
</compile_context>

<pallas_src>
import math

import jax
import jax.numpy as jnp
from jax.experimental import pallas as pl
from jax.experimental.pallas import tpu as pltpu


def _round_up(x: int, m: int) -> int:
    return (x + m - 1) // m * m


# --------------------------------------------------------------------------- kernel
def _mlp_kernel(x_ref, w1_ref, b1_ref, w2_ref, b2_ref, wo_ref, bo_ref, o_ref):
    # x / W arrive in bf16; every matmul accumulates in f32 on the MXU; biases are
    # f32 and added directly to the f32 accumulator.  Intermediates are cast back to
    # bf16 only to feed the next MXU pass.
    x = x_ref[...]

    h1 = jnp.dot(x, w1_ref[...], preferred_element_type=jnp.float32) + b1_ref[...]
    # default config: no activation / no normalization; dropout is identity in eval.
    h1 = h1.astype(x.dtype)

    h2 = jnp.dot(h1, w2_ref[...], preferred_element_type=jnp.float32) + b2_ref[...]
    h2 = h2.astype(x.dtype)

    out = jnp.dot(h2, wo_ref[...], preferred_element_type=jnp.float32) + bo_ref[...]
    o_ref[...] = out.astype(o_ref.dtype)


# ----------------------------------------------------------------- one-time weight prep
def prepare_mlp_params(params, *, compute_dtype=jnp.bfloat16, pad_to=128):
    """Pad all feature dims to multiples of `pad_to` (zero rows/cols -> numerically
    exact) and cast weights to the MXU compute dtype.  Biases stay f32 (tiny and
    VMEM-resident, so f32 storage is free).  One-time cost, outside the per-call path.
    Note: pad_to=256 can be preferable on v6e/v7x (256x256 MXU) for large dims."""
    w1, b1, w2, b2, wo, bo = params
    in_dim, h1_dim = w1.shape
    h2_dim = w2.shape[1]
    out_dim = wo.shape[1]

    in_pad = _round_up(in_dim, pad_to)
    h1_pad = _round_up(h1_dim, pad_to)
    h2_pad = _round_up(h2_dim, pad_to)
    out_pad = _round_up(out_dim, pad_to)

    w1 = jnp.pad(w1, ((0, in_pad - in_dim), (0, h1_pad - h1_dim))).astype(compute_dtype)
    b1 = jnp.pad(b1, ((0, 0), (0, h1_pad - h1_dim))).astype(jnp.float32)
    w2 = jnp.pad(w2, ((0, h1_pad - h1_dim), (0, h2_pad - h2_dim))).astype(compute_dtype)
    b2 = jnp.pad(b2, ((0, 0), (0, h2_pad - h2_dim))).astype(jnp.float32)
    wo = jnp.pad(wo, ((0, h2_pad - h2_dim), (0, out_pad - out_dim))).astype(compute_dtype)
    bo = jnp.pad(bo, ((0, 0), (0, out_pad - out_dim))).astype(jnp.float32)

    meta = dict(in_dim=in_dim, out_dim=out_dim,
                in_pad=in_pad, h1_pad=h1_pad, h2_pad=h2_pad, out_pad=out_pad)
    return (w1, b1, w2, b2, wo, bo), meta


# ---------------------------------------------------------------- per-gen VMEM budgeting
def _pick_tile_and_vmem(batch, in_pad, h1_pad, h2_pad, out_pad, out_itemsize,
                        block_batch, x_buffer_count):
    """Pick the batch tile and VMEM limit from the chip's physical VMEM.
    Resident (single-buffered) weights counted once; per-tile cost covers the
    pipelined x / out blocks plus the in-kernel f32 + bf16 intermediates."""
    try:
        phys = int(pltpu.get_tpu_info().vmem_capacity_bytes)
    except Exception:
        phys = 64 * 1024 * 1024  # conservative fallback: v7x per-TensorCore VMEM
    budget = int(phys * 0.70)    # headroom for Mosaic internal scratch

    resident = (2 * (in_pad * h1_pad + h1_pad * h2_pad + h2_pad * out_pad)  # bf16 W, Buffered(1)
                + 4 * (h1_pad + h2_pad + out_pad))                          # f32 biases

    def per_tile(tb):
        return (x_buffer_count * tb * in_pad * 2        # streaming x (bf16), Buffered(n)
                + 2 * tb * out_pad * out_itemsize       # streaming out (double-buffered)
                + tb * max(h1_pad, h2_pad) * (4 + 2))   # f32 accumulator + bf16 recast

    if batch <= block_batch:
        tb = batch                 # single full-dim block: no alignment constraint
    else:
        tb = block_batch           # multiple of 128 (v5e MXU / store-slot friendly)
        while tb > 128 and resident + per_tile(tb) > budget:
            tb //= 2

    need = resident + per_tile(tb)
    vmem_limit = int(min(max(need + (8 << 20), 32 << 20), int(phys * 0.85)))
    return tb, vmem_limit


# --------------------------------------------------------------------------- wrapper
def mlp_forward(x, prepared_params, meta, *, block_batch=512, out_dtype=None,
                x_buffer_count=2):
    """x: (B, ...) -> flattened to (B, input_dim).  Returns (B, output_dim).
    Pass out_dtype=jnp.bfloat16 to halve output writeback when the consumer allows."""
    w1, b1, w2, b2, wo, bo = prepared_params
    batch = x.shape[0]
    out_dtype = jnp.dtype(out_dtype if out_dtype is not None else x.dtype)
    block_batch = max(128, _round_up(block_batch, 128))

    x2d = x.reshape(batch, -1)  # flatten=True
    assert x2d.shape[1] == meta["in_dim"], (x2d.shape, meta["in_dim"])

    in_pad, h1_pad, h2_pad, out_pad = (meta[k] for k in ("in_pad", "h1_pad", "h2_pad", "out_pad"))
    if in_pad != meta["in_dim"]:
        # Zero columns so K of the first matmul is lane-aligned (exact).  Per-call
        # copy of x; negligible vs. MXU gain for realistic in_dim (cheap at demo size).
        x2d = jnp.pad(x2d, ((0, 0), (0, in_pad - meta["in_dim"])))
    x2d = x2d.astype(w1.dtype)

    tb, vmem_limit = _pick_tile_and_vmem(batch, in_pad, h1_pad, h2_pad, out_pad,
                                         out_dtype.itemsize, block_batch, x_buffer_count)
    grid = (pl.cdiv(batch, tb),)  # no batch padding: Pallas handles the ragged last block

    def _resident_spec(shape):
        # Grid-invariant block -> single buffer (no wasted double-buffer VMEM).
        nd = len(shape)
        return pl.BlockSpec(shape, lambda i: (0,) * nd, pipeline_mode=pl.Buffered(1))

    flops = 2 * batch * (in_pad * h1_pad + h1_pad * h2_pad + h2_pad * out_pad)
    bytes_accessed = (
        x2d.size * x2d.dtype.itemsize
        + sum(a.size * a.dtype.itemsize for a in (w1, b1, w2, b2, wo, bo))
        + batch * out_pad * out_dtype.itemsize
    )

    out = pl.pallas_call(
        _mlp_kernel,
        out_shape=jax.ShapeDtypeStruct((batch, out_pad), out_dtype),
        grid=grid,
        in_specs=[
            # streaming x tile; bump x_buffer_count to 3 if profiling shows exposed DMA
            pl.BlockSpec((tb, in_pad), lambda i: (i, 0),
                         pipeline_mode=pl.Buffered(x_buffer_count)),
            _resident_spec(w1.shape), _resident_spec(b1.shape),
            _resident_spec(w2.shape), _resident_spec(b2.shape),
            _resident_spec(wo.shape), _resident_spec(bo.shape),
        ],
        out_specs=pl.BlockSpec((tb, out_pad), lambda i: (i, 0)),
        compiler_params=pltpu.CompilerParams(
            # Batch axis is embarrassingly parallel -> megacore-shardable on v7x.
            dimension_semantics=("parallel",),
            vmem_limit_bytes=vmem_limit,
        ),
        cost_estimate=pl.CostEstimate(
            flops=flops, transcendentals=0, bytes_accessed=bytes_accessed),
    )(x2d, w1, b1, w2, b2, wo, bo)

    if meta["out_dim"] != out_pad:
        out = out[:, :meta["out_dim"]]  # strip zero-padded output lanes
    return out


# ------------------------------------------------------------------- init + reference
def init_mlp_params(key, input_dim, layers, output_dim, gain=0.01, dtype=jnp.float32):
    """Mirror the PyTorch module init:
       - hidden Linear layers: PyTorch default (uniform(-1/sqrt(fan_in), 1/sqrt(fan_in)))
       - output Linear weight: xavier_uniform_ with gain; bias: PyTorch default.
       Weights stored transposed: (in_dim, out_dim)."""
    params = []
    dims = [input_dim] + list(layers)
    for i in range(len(layers)):
        fan_in, fan_out = dims[i], dims[i + 1]
        key, kw, kb = jax.random.split(key, 3)
        bound = 1.0 / math.sqrt(fan_in)
        w = jax.random.uniform(kw, (fan_in, fan_out), dtype, -bound, bound)
        b = jax.random.uniform(kb, (1, fan_out), dtype, -bound, bound)
        params += [w, b]

    fan_in, fan_out = dims[-1], output_dim
    key, kw, kb = jax.random.split(key, 3)
    xav_bound = gain * math.sqrt(6.0 / (fan_in + fan_out))
    wo = jax.random.uniform(kw, (fan_in, fan_out), dtype, -xav_bound, xav_bound)
    b_bound = 1.0 / math.sqrt(fan_in)
    bo = jax.random.uniform(kb, (1, fan_out), dtype, -b_bound, b_bound)
    params += [wo, bo]
    return tuple(params)


def mlp_reference(x, params):
    """Pure-JAX f32 reference of the same forward pass."""
    batch = x.shape[0]
    h = x.reshape(batch, -1).astype(jnp.float32)
    w1, b1, w2, b2, wo, bo = params
    h = h @ w1 + b1
    h = h @ w2 + b2
    return (h @ wo + bo).astype(x.dtype)


# ------------------------------------------------------------------------------ main
if __name__ == "__main__":
    # Small shapes consistent with the module: input (2, 4, 8) flattened to input_dim=32.
    batch = 2
    input_dim = 4 * 8
    hidden_layers = [64, 64]
    output_dim = 16

    key = jax.random.PRNGKey(0)
    key, kx = jax.random.split(key)
    x = jax.random.normal(kx, (batch, 4, 8), dtype=jnp.float32)

    # 1) Module-default init (output gain=0.01).
    params = init_mlp_params(key, input_dim, hidden_layers, output_dim, gain=0.01)
    prepared, meta = prepare_mlp_params(params)
    out = jax.block_until_ready(mlp_forward(x, prepared, meta))
    ref = mlp_reference(x, params)
    assert out.shape == (batch, output_dim), out.shape
    assert jnp.allclose(out, ref, atol=1e-2, rtol=1e-2), "mismatch vs reference (gain=0.01)"

    # 2) Realistic-magnitude check (gain=1.0) so bf16 accuracy is exercised non-trivially.
    params_big = init_mlp_params(key, input_dim, hidden_layers, output_dim, gain=1.0)
    prepared_b, meta_b = prepare_mlp_params(params_big)
    out_b = jax.block_until_ready(mlp_forward(x, prepared_b, meta_b))
    ref_b = mlp_reference(x, params_big)
    rel_err = jnp.max(jnp.abs(out_b - ref_b)) / (jnp.max(jnp.abs(ref_b)) + 1e-6)
    assert rel_err < 3e-2, f"bf16 relative error too large: {float(rel_err)}"

    print("KERNEL_OK")
</pallas_src>

<mosaic_0001>
module attributes {stable_mosaic.version = 11 : i64} {
  func.func @_mlp_kernel(%arg0: i32, %arg1: memref<2x128xbf16, #tpu.memory_space<vmem>>, %arg2: memref<128x128xbf16, #tpu.memory_space<vmem>>, %arg3: memref<1x128xf32, #tpu.memory_space<vmem>>, %arg4: memref<128x128xbf16, #tpu.memory_space<vmem>>, %arg5: memref<1x128xf32, #tpu.memory_space<vmem>>, %arg6: memref<128x128xbf16, #tpu.memory_space<vmem>>, %arg7: memref<1x128xf32, #tpu.memory_space<vmem>>, %arg8: memref<2x128xf32, #tpu.memory_space<vmem>>) attributes {dimension_semantics = [#tpu.dimension_semantics<parallel>], iteration_bounds = array<i64: 1>, scalar_prefetch = 0 : i64, scratch_operands = 0 : i64, tpu.core_type = #tpu.core_type<tc>, window_params = [{pipeline_mode = #tpu.pipeline_mode<double_buffered>, transform_indices = @transform_0, window_bounds = array<i64: 2, 128>}, {pipeline_mode = #tpu.pipeline_mode<synchronous>, transform_indices = @transform_1, window_bounds = array<i64: 128, 128>}, {pipeline_mode = #tpu.pipeline_mode<synchronous>, transform_indices = @transform_2, window_bounds = array<i64: 1, 128>}, {pipeline_mode = #tpu.pipeline_mode<synchronous>, transform_indices = @transform_3, window_bounds = array<i64: 128, 128>}, {pipeline_mode = #tpu.pipeline_mode<synchronous>, transform_indices = @transform_4, window_bounds = array<i64: 1, 128>}, {pipeline_mode = #tpu.pipeline_mode<synchronous>, transform_indices = @transform_5, window_bounds = array<i64: 128, 128>}, {pipeline_mode = #tpu.pipeline_mode<synchronous>, transform_indices = @transform_6, window_bounds = array<i64: 1, 128>}, {transform_indices = @transform_7, window_bounds = array<i64: 2, 128>}]} {
    %c0 = arith.constant 0 : index
    %c0_0 = arith.constant 0 : index
    %0 = vector.load %arg1[%c0, %c0_0] : memref<2x128xbf16, #tpu.memory_space<vmem>>, vector<2x128xbf16>
    %c0_1 = arith.constant 0 : index
    %c0_2 = arith.constant 0 : index
    %1 = vector.load %arg2[%c0_1, %c0_2] : memref<128x128xbf16, #tpu.memory_space<vmem>>, vector<128x128xbf16>
    %cst = arith.constant dense<0.000000e+00> : vector<2x128xf32>
    %2 = tpu.matmul %0, %1, %cst {dimension_numbers = #tpu.dot_dimension_numbers<[1], [0], [0], [1], [0, 0, 1, 1], [], []>} : vector<2x128xbf16>, vector<128x128xbf16>, vector<2x128xf32> -> vector<2x128xf32>
    %c0_3 = arith.constant 0 : index
    %c0_4 = arith.constant 0 : index
    %3 = vector.load %arg3[%c0_3, %c0_4] : memref<1x128xf32, #tpu.memory_space<vmem>>, vector<1x128xf32>
    %4 = vector.broadcast %3 : vector<1x128xf32> to vector<2x128xf32>
    %5 = arith.addf %2, %4 : vector<2x128xf32>
    %6 = arith.truncf %5 : vector<2x128xf32> to vector<2x128xbf16>
    %c0_5 = arith.constant 0 : index
    %c0_6 = arith.constant 0 : index
    %7 = vector.load %arg4[%c0_5, %c0_6] : memref<128x128xbf16, #tpu.memory_space<vmem>>, vector<128x128xbf16>
    %cst_7 = arith.constant dense<0.000000e+00> : vector<2x128xf32>
    %8 = tpu.matmul %6, %7, %cst_7 {dimension_numbers = #tpu.dot_dimension_numbers<[1], [0], [0], [1], [0, 0, 1, 1], [], []>} : vector<2x128xbf16>, vector<128x128xbf16>, vector<2x128xf32> -> vector<2x128xf32>
    %c0_8 = arith.constant 0 : index
    %c0_9 = arith.constant 0 : index
    %9 = vector.load %arg5[%c0_8, %c0_9] : memref<1x128xf32, #tpu.memory_space<vmem>>, vector<1x128xf32>
    %10 = vector.broadcast %9 : vector<1x128xf32> to vector<2x128xf32>
    %11 = arith.addf %8, %10 : vector<2x128xf32>
    %12 = arith.truncf %11 : vector<2x128xf32> to vector<2x128xbf16>
    %c0_10 = arith.constant 0 : index
    %c0_11 = arith.constant 0 : index
    %13 = vector.load %arg6[%c0_10, %c0_11] : memref<128x128xbf16, #tpu.memory_space<vmem>>, vector<128x128xbf16>
    %cst_12 = arith.constant dense<0.000000e+00> : vector<2x128xf32>
    %14 = tpu.matmul %12, %13, %cst_12 {dimension_numbers = #tpu.dot_dimension_numbers<[1], [0], [0], [1], [0, 0, 1, 1], [], []>} : vector<2x128xbf16>, vector<128x128xbf16>, vector<2x128xf32> -> vector<2x128xf32>
    %c0_13 = arith.constant 0 : index
    %c0_14 = arith.constant 0 : index
    %15 = vector.load %arg7[%c0_13, %c0_14] : memref<1x128xf32, #tpu.memory_space<vmem>>, vector<1x128xf32>
    %16 = vector.broadcast %15 : vector<1x128xf32> to vector<2x128xf32>
    %17 = arith.addf %14, %16 : vector<2x128xf32>
    %c0_15 = arith.constant 0 : index
    %c0_16 = arith.constant 0 : index
    %18 = vector.load %arg8[%c0_15, %c0_16] : memref<2x128xf32, #tpu.memory_space<vmem>>, vector<2x128xf32>
    tpu.vector_store %arg8[%c0_15, %c0_16], %17 {strides = array<i32>} : memref<2x128xf32, #tpu.memory_space<vmem>>, vector<2x128xf32>,
    return
  }
  func.func @transform_0(%arg0: i32) -> (i32, i32) {
    %c0_i32 = arith.constant 0 : i32
    %c0_i32_0 = arith.constant 0 : i32
    return %arg0, %c0_i32 : i32, i32
  }
  func.func @transform_1(%arg0: i32) -> (i32, i32) {
    %c0_i32 = arith.constant 0 : i32
    %c0_i32_0 = arith.constant 0 : i32
    %c0_i32_1 = arith.constant 0 : i32
    return %c0_i32, %c0_i32_0 : i32, i32
  }
  func.func @transform_2(%arg0: i32) -> (i32, i32) {
    %c0_i32 = arith.constant 0 : i32
    %c0_i32_0 = arith.constant 0 : i32
    %c0_i32_1 = arith.constant 0 : i32
    return %c0_i32, %c0_i32_0 : i32, i32
  }
  func.func @transform_3(%arg0: i32) -> (i32, i32) {
    %c0_i32 = arith.constant 0 : i32
    %c0_i32_0 = arith.constant 0 : i32
    %c0_i32_1 = arith.constant 0 : i32
    return %c0_i32, %c0_i32_0 : i32, i32
  }
  func.func @transform_4(%arg0: i32) -> (i32, i32) {
    %c0_i32 = arith.constant 0 : i32
    %c0_i32_0 = arith.constant 0 : i32
    %c0_i32_1 = arith.constant 0 : i32
    return %c0_i32, %c0_i32_0 : i32, i32
  }
  func.func @transform_5(%arg0: i32) -> (i32, i32) {
    %c0_i32 = arith.constant 0 : i32
    %c0_i32_0 = arith.constant 0 : i32
    %c0_i32_1 = arith.constant 0 : i32
    return %c0_i32, %c0_i32_0 : i32, i32
  }
  func.func @transform_6(%arg0: i32) -> (i32, i32) {
    %c0_i32 = arith.constant 0 : i32
    %c0_i32_0 = arith.constant 0 : i32
    %c0_i32_1 = arith.constant 0 : i32
    return %c0_i32, %c0_i32_0 : i32, i32
  }
  func.func @transform_7(%arg0: i32) -> (i32, i32) {
    %c0_i32 = arith.constant 0 : i32
    %c0_i32_0 = arith.constant 0 : i32
    return %arg0, %c0_i32 : i32, i32
  }
}

</mosaic_0001>

<bundles_post_ra>
// kernel: tpu_custom_call.1
= control target key start
LH: loop header
LB: loop body
LE: loop exit
PB: predicated region body
PF: predicated region fallthrough
CT: control target
= control target key end

     0   :  { %12 = vsyncpa [#allocation3], 0  ;;  %s683_s0 = inlined_call_operand.hbm [shape: bf16[2,128], index: 0, kind: input, shape index: {}]   ;;  %s684_s1 = inlined_call_operand.hbm [shape: bf16[128,128], index: 1, kind: input, shape index: {}]   ;;  %s685_s2 = inlined_call_operand.vmem [shape: f32[1,128], index: 2, kind: input, shape index: {}]   ;;  %s686_s3 = inlined_call_operand.hbm [shape: bf16[128,128], index: 3, kind: input, shape index: {}]   ;;  %s687_s4 = inlined_call_operand.vmem [shape: f32[1,128], index: 4, kind: input, shape index: {}]   ;;  %s688_s5 = inlined_call_operand.hbm [shape: bf16[128,128], index: 5, kind: input, shape index: {}]   ;;  %s689_s6 = inlined_call_operand.vmem [shape: f32[1,128], index: 6, kind: input, shape index: {}]   ;;  %s690_s7 = inlined_call_operand.hbm [shape: f32[2,128], index: 7, kind: output, shape index: {}]  }
   0x1   :  { %13 = vsyncpa [#allocation6], 0 }
   0x2   :  { %14 = vsyncpa [#allocation9], 0  ;;  %s31_s26 = sshll.u32 %s684_s1, 4  ;;  %s32_s26 = int_to_ptr.hbm [resolvable:$true] %s31_s26 }
   0x3   :  { %15 = vsyncpa [#allocation4], 0  ;;  %s612_s27 = smov [#allocation5]   ;;  %s21_s8 = sshll.u32 %s683_s0, 4  ;;  %s22_s8 = int_to_ptr.hbm [resolvable:$true] %s21_s8 }
   0x4   :  { %s33_s28 = sshll.u32 %s612_s27, 4  ;;  %s613_s9 = smov 64   ;;  %s34_s28 = int_to_ptr.vmem [resolvable:$true] %s33_s28 }
   0x5   :  { %s614_s10 = smov 4   ;;  %s615_s11 = smov [#allocation2]  }
   0x6   :  { %39 = dma.hbm_to_vmem [thread:$0]  %s32_s26, 1024, %s34_s28, [#allocation6], %s613_s9, %s613_s9, %s614_s10  }
   0x7   :  { %s23_s12 = sshll.u32 %s615_s11, 4  ;;  %s46_s15 = sshll.u32 %s686_s3, 4  ;;  %s24_s12 = int_to_ptr.vmem [resolvable:$true] %s23_s12  ;;  %s47_s15 = int_to_ptr.hbm [resolvable:$true] %s46_s15 }
   0x8   :  { %26 = dma.hbm_to_vmem [thread:$0]  %s22_s8, 16, %s24_s12, [#allocation3]  }
   0x9   :  { %s61_s17 = sshll.u32 %s688_s5, 4  ;;  %s616_s18 = smov [#allocation7]   ;;  %s62_s17 = int_to_ptr.hbm [resolvable:$true] %s61_s17 }
   0xa   :  { %s48_s19 = sshll.u32 %s616_s18, 4  ;;  %s617_s0 = smov [#allocation8]   ;;  %s49_s19 = int_to_ptr.vmem [resolvable:$true] %s48_s19 }
   0xb   :  { %54 = dma.hbm_to_vmem [thread:$0]  %s47_s15, 1024, %s49_s19, [#allocation6], %s613_s9, %s613_s9, %s614_s10  }
   0xc   :  { %s63_s20 = sshll.u32 %s617_s0, 4  ;;  %s64_s20 = int_to_ptr.vmem [resolvable:$true] %s63_s20 }
   0xd   :  { %69 = dma.hbm_to_vmem [thread:$0]  %s62_s17, 1024, %s64_s20, [#allocation9], %s613_s9, %s613_s9, %s614_s10  }
   0xe   :  { %604 = dma.done.wait [#allocation3], 16  }
   0xf   :  { %605 = vsyncadd [#allocation3], 4294967280 }
  0x10   :  { %606 = dma.done.wait [#allocation6], 2048  }
  0x11   :  { %607 = vsyncadd [#allocation6], 4294965248 }
  0x12   :  { %608 = dma.done.wait [#allocation9], 1024  }
  0x13   :  { %609 = vsyncadd [#allocation9], 4294966272  ;;  %v457_v0 = vld [vmem:[#allocation5 + $0x38] sm:$0xff]  ;;  %v456_v1 = vld [vmem:[#allocation5 + $0x30] sm:$0xff]  ;;  %s618_s24 = smov [#allocation10]   ;;  %s342_s28 = sshll.u32 %s690_s7, 4  ;;  %s343_s28 = int_to_ptr.hbm [resolvable:$true] %s342_s28 }
  0x14   :  { %157 = vmatpush.bf16.msra.mxu0 %v457_v0  ;;  %v465_v2 = vld [vmem:[#allocation7 + $0x38] sm:$0xff]  ;;  %v464_v3 = vld [vmem:[#allocation7 + $0x30] sm:$0xff]  ;;  %v455_v4 = vld [vmem:[#allocation5 + $0x28] sm:$0xff]  ;;  %s340_s25 = sshll.u32 %s618_s24, 4  ;;  %s341_s25 = int_to_ptr.vmem [resolvable:$true] %s340_s25 }
  0x15   :  { %239 = vmatpush.bf16.msra.mxu1 %v465_v2  ;;  %v463_v5 = vld [vmem:[#allocation7 + $0x28] sm:$0xff]  ;;  %v454_v6 = vld [vmem:[#allocation5 + $0x20] sm:$0xff]  ;;  %v453_v8 = vld [vmem:[#allocation5 + $0x18] sm:$0xff] }
  0x16   :  { %v462_v7 = vld [vmem:[#allocation7 + $0x20] sm:$0xff]  ;;  %v461_v9 = vld [vmem:[#allocation7 + $0x18] sm:$0xff]  ;;  %v452_v10 = vld [vmem:[#allocation5 + $0x10] sm:$0xff] }
  0x17   :  { %v460_v11 = vld [vmem:[#allocation7 + $0x10] sm:$0xff]  ;;  %v451_v12 = vld [vmem:[#allocation5 + $0x8] sm:$0xff]  ;;  %v450_v14 = vld [vmem:[#allocation5] sm:$0xff] }
  0x18   :  { %158 = vmatpush.bf16.msra.mxu0 %v456_v1  ;;  %v459_v13 = vld [vmem:[#allocation7 + $0x8] sm:$0xff]  ;;  %v88_v15 = vld [vmem:[#allocation2] sm:$0x1]  ;;  %v458_v16 = vld [vmem:[#allocation7] sm:$0xff] }
  0x19   :  { %240 = vmatpush.bf16.msra.mxu1 %v464_v3  ;;  %v473_v17 = vld [vmem:[#allocation8 + $0x38] sm:$0xff]  ;;  %v472_v18 = vld [vmem:[#allocation8 + $0x30] sm:$0xff]  ;;  %v471_v19 = vld [vmem:[#allocation8 + $0x28] sm:$0xff] }
  0x1a   :  { %321 = vmatpush.bf16.msra.mxu2 %v473_v17  ;;  %v470_v20 = vld [vmem:[#allocation8 + $0x20] sm:$0xff]  ;;  %v469_v21 = vld [vmem:[#allocation8 + $0x18] sm:$0xff]  ;;  %v468_v22 = vld [vmem:[#allocation8 + $0x10] sm:$0xff] }
  0x1b   :  { %v481_v23 = vld [vmem:[%s685_s2] ss:$0 sm:$0xff]  ;;  %v467_v24 = vld [vmem:[#allocation8 + $0x8] sm:$0xff]  ;;  %v466_v29 = vld [vmem:[#allocation8] sm:$0xff] }
  0x1c   :  { %159 = vmatpush.bf16.msra.mxu0 %v455_v4  ;;  %v482_v30 = vld [vmem:[%s687_s4] ss:$0 sm:$0xff] }
  0x1d   :  { %241 = vmatpush.bf16.msra.mxu1 %v463_v5  ;;  %v483_v35 = vld [vmem:[%s689_s6] ss:$0 sm:$0xff] }
  0x1e   :  { %322 = vmatpush.bf16.msra.mxu2 %v472_v18 }
  0x20   :  { %160 = vmatpush.bf16.msra.mxu0 %v454_v6 }
  0x21   :  { %242 = vmatpush.bf16.msra.mxu1 %v462_v7 }
  0x22   :  { %323 = vmatpush.bf16.msra.mxu2 %v471_v19 }
  0x24   :  { %161 = vmatpush.bf16.msra.mxu0 %v453_v8 }
  0x25   :  { %243 = vmatpush.bf16.msra.mxu1 %v461_v9 }
  0x26   :  { %324 = vmatpush.bf16.msra.mxu2 %v470_v20 }
  0x28   :  { %162 = vmatpush.bf16.msra.mxu0 %v452_v10 }
  0x29   :  { %244 = vmatpush.bf16.msra.mxu1 %v460_v11 }
  0x2a   :  { %325 = vmatpush.bf16.msra.mxu2 %v469_v21 }
  0x2c   :  { %163 = vmatpush.bf16.msra.mxu0 %v451_v12 }
  0x2d   :  { %245 = vmatpush.bf16.msra.mxu1 %v459_v13 }
  0x2e   :  { %326 = vmatpush.bf16.msra.mxu2 %v468_v22 }
  0x30   :  { %164 = vmatpush.bf16.msra.mxu0 %v450_v14 }
  0x31   :  { %246 = vmatpush.bf16.msra.mxu1 %v458_v16 }
  0x32   :  { %327 = vmatpush.bf16.msra.mxu2 %v467_v24 }
  0x33   :  { %165 = vmatmul.bf16.vlgmr.msra.gmra.mxu0 %v88_v15 }
  0x36   :  { %328 = vmatpush.bf16.msra.mxu2 %v466_v29 }
  0xb0   :  { %v166_v25 = vpop.f32.mrf.mxu0 }
  0xb1   :  { %v167_v26 = vadd.f32 %v481_v23, %v166_v25 }
  0xb3   :  { %v170_v27 = vpack.c.bf16 %v167_v26, %v167_v26 }
  0xb5   :  { %247 = vmatmul.bf16.vlgmr.msra.gmra.mxu1 %v170_v27 }
  0xb8   :  { %v168_v28 = vpop.f32.mrf.mxu0 }
 0x132   :  { %v248_v31 = vpop.f32.mrf.mxu1 }
 0x133   :  { %v249_v32 = vadd.f32 %v482_v30, %v248_v31 }
 0x135   :  { %v252_v33 = vpack.c.bf16 %v249_v32, %v249_v32 }
 0x137   :  { %329 = vmatmul.bf16.vlgmr.msra.gmra.mxu2 %v252_v33 }
 0x13a   :  { %v250_v34 = vpop.f32.mrf.mxu1 }
 0x1ba   :  { %v330_v36 = vpop.f32.mrf.mxu2 }
 0x1bb   :  { %v331_v37 = vadd.f32 %v483_v35, %v330_v36 }
 0x1bd   :  { %334 = vst [vmem:[#allocation10] sm:$0x3] %v331_v37 }
 0x1be   :  { %345 = dma.vmem_to_hbm [thread:$0]  %s341_s25, 32, %s343_s28, [#allocation4]  }
 0x1c2   :  { %v332_v38 = vpop.f32.mrf.mxu2 }
 0x1c3   :  { %610 = dma.done.wait [#allocation4], 32  }
 0x1c4   :  { %611 = vsyncadd [#allocation4], 4294967264 }
 0x1c5   :  { %350 = vsyncpa [#allocation3], 1 }
 0x1c6   :  { %351 = vsyncpa [#allocation6], 1 }
 0x1c7   :  { %352 = vsyncpa [#allocation9], 1 }
 0x1c8   :  { %353 = vsyncpa [#allocation4], 1 }

</bundles_post_ra>
